<compile_context>
chip_gen: v7x
topology: tpu7x:2x2x1
jax: 0.10.0
libtpu: 0.0.40
codegen_flags: <defaults>
</compile_context>

<pallas_src>
import jax
import jax.numpy as jnp
from jax.experimental import pallas as pl
from jax.experimental.pallas import tpu as pltpu

_SUBLANE = 8
_LANE = 128


def _make_clip_kernel(cap_value):
    def _clip_kernel(x_ref, o_ref):
        x = x_ref[...]
        lo = jnp.zeros((), dtype=x.dtype)
        hi = jnp.asarray(cap_value, dtype=x.dtype)
        # relu followed by minimum with 255  ==  clip to [0, 255]
        o_ref[...] = jnp.minimum(jnp.maximum(x, lo), hi)

    return _clip_kernel


def clip_forward(x, *, target_block_bytes=2 * 1024 * 1024, donate=False):
    """Applies min(relu(x), 255) elementwise via a Pallas TPU kernel."""
    orig_shape = x.shape
    dtype = x.dtype
    if x.size == 0:
        return x

    # Cap value representable in the input dtype (int8 etc. cannot hold 255;
    # clamping the cap to iinfo.max is semantically identical for min()).
    if jnp.issubdtype(dtype, jnp.floating):
        cap_value = 255.0
    elif jnp.issubdtype(dtype, jnp.integer):
        cap_value = min(255, int(jnp.iinfo(dtype).max))
    else:
        raise TypeError(f"clip_forward: unsupported dtype {dtype}")

    # Collapse ONLY leading dims -> free reshape (tiled last-two-dim layout is
    # untouched), no pad, no relayout copies.
    if x.ndim == 0:
        x3 = x.reshape(1, 1, 1)
    elif x.ndim == 1:
        x3 = x.reshape(1, 1, x.shape[0])
    elif x.ndim == 2:
        x3 = x.reshape(1, x.shape[0], x.shape[1])
    else:
        x3 = x.reshape(-1, x.shape[-2], x.shape[-1])

    B, R, C = x3.shape
    itemsize = jnp.dtype(dtype).itemsize
    padded_r = -(-R // _SUBLANE) * _SUBLANE
    padded_c = -(-C // _LANE) * _LANE
    # True VMEM/HBM footprint of one leading slice (lane/sublane padded).
    slice_bytes = padded_r * padded_c * itemsize

    if slice_bytes <= target_block_bytes:
        # Tile along the collapsed leading axis only; last two dims stay full
        # (full-extent block dims are exempt from the (8,128) rule).
        block_b = max(1, min(B, target_block_bytes // slice_bytes))
        block_r = R
    else:
        # One leading slice already exceeds the target block: also tile the
        # second-to-last dim in multiples of 8 (Pallas masks the trailing
        # partial block); the last dim stays full.
        block_b = 1
        if R > _SUBLANE:
            rows = max(_SUBLANE, target_block_bytes // (padded_c * itemsize))
            block_r = min(R, (rows // _SUBLANE) * _SUBLANE)
        else:
            block_r = R

    nb = pl.cdiv(B, block_b)
    nr = pl.cdiv(R, block_r)

    # Mid-size inputs that land on a single block: split into >=2 blocks so
    # v7x's two TensorCores can each take half and in/out DMA overlaps compute.
    total_bytes = B * slice_bytes
    if nb * nr == 1 and B >= 2 and total_bytes >= 256 * 1024:
        block_b = (B + 1) // 2
        nb = pl.cdiv(B, block_b)

    grid = (nb, nr)
    block_shape = (block_b, block_r, C)

    def index_map(i, j):
        return (i, j, 0)

    spec = pl.BlockSpec(block_shape, index_map)

    # Safety valve: only raise the scoped-VMEM limit when a block is forced to
    # be large (pathological shapes); the normal ~2 MiB blocks fit everywhere.
    block_bytes = (
        block_b * (-(-block_r // _SUBLANE) * _SUBLANE) * padded_c * itemsize
    )
    vmem_needed = 4 * block_bytes + (1 << 20)  # double-buffered in + out
    compiler_kwargs = {}
    if vmem_needed > 16 * 1024 * 1024:
        compiler_kwargs["vmem_limit_bytes"] = min(vmem_needed, 100 * 1024 * 1024)

    cost = pl.CostEstimate(
        flops=2 * int(x.size),               # max + min per element
        transcendentals=0,
        bytes_accessed=2 * int(x.size) * itemsize,
    )

    out3 = pl.pallas_call(
        _make_clip_kernel(cap_value),
        out_shape=jax.ShapeDtypeStruct((B, R, C), dtype),
        grid_spec=pltpu.PrefetchScalarGridSpec(
            num_scalar_prefetch=0,
            grid=grid,
            in_specs=[spec],
            out_specs=spec,
        ),
        compiler_params=pltpu.CompilerParams(
            dimension_semantics=("parallel", "parallel"),
            **compiler_kwargs,
        ),
        cost_estimate=cost,
        input_output_aliases={0: 0} if donate else {},
    )(x3)

    return out3.reshape(orig_shape)


if __name__ == "__main__":
    key = jax.random.PRNGKey(0)
    # Small NCHW input consistent with a conv-style module: (2, 4, 16, 16).
    # Scale values so some exceed 255 and some are negative, exercising both
    # the relu floor and the 255 cap.
    x = jax.random.normal(key, (2, 4, 16, 16), dtype=jnp.float32) * 200.0

    out = clip_forward(x)
    out = jax.block_until_ready(out)

    # Reference check in plain JAX (mirrors torch.minimum(relu(x), 255)).
    ref = jnp.minimum(jnp.maximum(x, 0.0), 255.0)
    assert out.shape == x.shape and out.dtype == x.dtype
    assert jnp.allclose(out, ref), "mismatch vs reference"

    print("KERNEL_OK")
</pallas_src>

<mosaic_0001>
module attributes {stable_mosaic.version = 11 : i64} {
  func.func @_clip_kernel(%arg0: i32, %arg1: i32, %arg2: memref<8x16x16xf32, #tpu.memory_space<vmem>>, %arg3: memref<8x16x16xf32, #tpu.memory_space<vmem>>) attributes {dimension_semantics = [#tpu.dimension_semantics<parallel>, #tpu.dimension_semantics<parallel>], iteration_bounds = array<i64: 1, 1>, scalar_prefetch = 0 : i64, scratch_operands = 0 : i64, tpu.core_type = #tpu.core_type<tc>, window_params = [{transform_indices = @transform_0, window_bounds = array<i64: 8, 16, 16>}, {transform_indices = @transform_1, window_bounds = array<i64: 8, 16, 16>}]} {
    %c0 = arith.constant 0 : index
    %c0_0 = arith.constant 0 : index
    %c0_1 = arith.constant 0 : index
    %0 = vector.load %arg2[%c0, %c0_0, %c0_1] : memref<8x16x16xf32, #tpu.memory_space<vmem>>, vector<8x16x16xf32>
    %cst = arith.constant 0.000000e+00 : f32
    %1 = vector.broadcast %cst : f32 to vector<8x16x16xf32>
    %2 = arith.maximumf %0, %1 : vector<8x16x16xf32>
    %cst_2 = arith.constant 2.550000e+02 : f32
    %3 = vector.broadcast %cst_2 : f32 to vector<8x16x16xf32>
    %4 = arith.minimumf %2, %3 : vector<8x16x16xf32>
    %c0_3 = arith.constant 0 : index
    %c0_4 = arith.constant 0 : index
    %c0_5 = arith.constant 0 : index
    %5 = vector.load %arg3[%c0_3, %c0_4, %c0_5] : memref<8x16x16xf32, #tpu.memory_space<vmem>>, vector<8x16x16xf32>
    tpu.vector_store %arg3[%c0_3, %c0_4, %c0_5], %4 {strides = array<i32>} : memref<8x16x16xf32, #tpu.memory_space<vmem>>, vector<8x16x16xf32>,
    return
  }
  func.func @transform_0(%arg0: i32, %arg1: i32) -> (i32, i32, i32) {
    %c0_i32 = arith.constant 0 : i32
    %c0_i32_0 = arith.constant 0 : i32
    return %arg0, %arg1, %c0_i32 : i32, i32, i32
  }
  func.func @transform_1(%arg0: i32, %arg1: i32) -> (i32, i32, i32) {
    %c0_i32 = arith.constant 0 : i32
    %c0_i32_0 = arith.constant 0 : i32
    return %arg0, %arg1, %c0_i32 : i32, i32, i32
  }
}

</mosaic_0001>

<bundles_post_ra>
// kernel: tpu_custom_call.1
= control target key start
LH: loop header
LB: loop body
LE: loop exit
PB: predicated region body
PF: predicated region fallthrough
CT: control target
= control target key end

     0   :  { %6 = vsyncpa [#allocation3], 0  ;;  %s217_s0 = inlined_call_operand.hbm [shape: f32[8,16,16], index: 0, kind: input, shape index: {}]   ;;  %s218_s1 = inlined_call_operand.hbm [shape: f32[8,16,16], index: 1, kind: output, shape index: {}]  }
   0x1   :  { %7 = vsyncpa [#allocation4], 0  ;;  %s157_s6 = smov [#allocation2]   ;;  %s109_s10 = scalar_lea.hbm %s217_s0, 2048 }
   0x2   :  { %s13_s7 = sshll.u32 %s157_s6, 4  ;;  %p110_p0 = scmp.ne.s32.totalorder %s217_s0, %s109_s10  ;;  %s14_s7 = int_to_ptr.vmem [resolvable:$true] %s13_s7 }
   0x3   :  { %p113_p1 = scmp.lt.u32.totalorder %s109_s10, %s217_s0 }
   0x5   :  { %p115_p2 = pnand %p113_p1, %p110_p0 }
   0x7   :  { %118 = shalt.err (!%p115_p2)
}
   0x8   :  { %s119_s15 = scalar_lea.vmem %s14_s7, 2048  ;;  %p124_p4 = scmp.lt.s32.totalorder %s14_s7, %s14_s7 }
   0x9   :  { %p120_p3 = scmp.ne.s32.totalorder %s14_s7, %s119_s15  ;;  %p125_p5 = scmp.lt.s32.totalorder %s119_s15, %s119_s15 }
   0xb   :  { %p126_p6 = por %p125_p5, %p124_p4 }
   0xd   :  { %p127_p7 = pnand %p126_p6, %p120_p3 }
   0xf   :  { %130 = shalt.err (!%p127_p7)
}
  0x10   :  { %s158_s16 = smov 128   ;;  %s159_s17 = smov 8  }
  0x11   :  { %19 = dma.hbm_to_vmem [thread:$0]  %s217_s0, 2048, %s14_s7, [#allocation3], %s158_s16, %s158_s16, %s159_s17  }
  0x12   :  { %153 = dma.done.wait [#allocation3], 2048  }
  0x13   :  { %154 = vsyncadd [#allocation3], 4294965248  ;;  %v23_v0 = vld [vmem:[#allocation2] sm:$0xff]  ;;  %vm71_vm0 = vcmask 130048   ;;  %v24_v1 = vld [vmem:[#allocation2 + $0x8] sm:$0xff]  ;;  %s160_s0 = smov [#allocation5]  }
  0x14   :  { %v25_v2 = vld [vmem:[#allocation2 + $0x10] sm:$0xff]  ;;  %v39_v3 = vmax.f32 %v23_v0, 0.0  ;;  %v40_v4 = vmax.f32 %v24_v1, 0.0  ;;  %v26_v6 = vld [vmem:[#allocation2 + $0x18] sm:$0xff]  ;;  %v27_v7 = vld [vmem:[#allocation2 + $0x20] sm:$0xff]  ;;  %s93_s20 = sshll.u32 %s160_s0, 4  ;;  %s94_s20 = int_to_ptr.vmem [resolvable:$true] %s93_s20 }
  0x15   :  { %v41_v5 = vmax.f32 %v25_v2, 0.0  ;;  %v28_v8 = vld [vmem:[#allocation2 + $0x28] sm:$0xff]  ;;  %v42_v9 = vmax.f32 %v26_v6, 0.0  ;;  %v43_v10 = vmax.f32 %v27_v7, 0.0  ;;  %v29_v12 = vld [vmem:[#allocation2 + $0x30] sm:$0xff]  ;;  %v30_v13 = vld [vmem:[#allocation2 + $0x38] sm:$0xff]  ;;  %p136_p9 = scmp.lt.s32.totalorder %s94_s20, %s94_s20 }
  0x16   :  { %v44_v11 = vmax.f32 %v28_v8, 0.0  ;;  %v31_v14 = vld [vmem:[#allocation2 + $0x40] sm:$0xff]  ;;  %v55_v15 = vmin.f32 %v39_v3, 255.0  ;;  %v56_v16 = vmin.f32 %v40_v4, 255.0  ;;  %v45_v18 = vmax.f32 %v29_v12, 0.0  ;;  %v32_v19 = vld [vmem:[#allocation2 + $0x48] sm:$0xff] }
  0x17   :  { %v57_v17 = vmin.f32 %v41_v5, 255.0  ;;  %v33_v20 = vld [vmem:[#allocation2 + $0x50] sm:$0xff]  ;;  %v58_v21 = vmin.f32 %v42_v9, 255.0  ;;  %v59_v22 = vmin.f32 %v43_v10, 255.0  ;;  %v46_v24 = vmax.f32 %v30_v13, 0.0  ;;  %v34_v25 = vld [vmem:[#allocation2 + $0x58] sm:$0xff] }
  0x18   :  { %v60_v23 = vmin.f32 %v44_v11, 255.0  ;;  %v35_v26 = vld [vmem:[#allocation2 + $0x60] sm:$0xff]  ;;  %72 = vst.msk [vmem:[#allocation5] sm:$0xff] %vm71_vm0, %v55_v15  ;;  %73 = vst.msk [vmem:[#allocation5 + $0x8] sm:$0xff] %vm71_vm0, %v56_v16  ;;  %v61_v27 = vmin.f32 %v45_v18, 255.0  ;;  %v47_v28 = vmax.f32 %v31_v14, 0.0 }
  0x19   :  { %74 = vst.msk [vmem:[#allocation5 + $0x10] sm:$0xff] %vm71_vm0, %v57_v17  ;;  %v48_v29 = vmax.f32 %v32_v19, 0.0  ;;  %v49_v30 = vmax.f32 %v33_v20, 0.0  ;;  %v36_v31 = vld [vmem:[#allocation2 + $0x68] sm:$0xff]  ;;  %v37_v32 = vld [vmem:[#allocation2 + $0x70] sm:$0xff]  ;;  %75 = vst.msk [vmem:[#allocation5 + $0x18] sm:$0xff] %vm71_vm0, %v58_v21 }
  0x1a   :  { %76 = vst.msk [vmem:[#allocation5 + $0x20] sm:$0xff] %vm71_vm0, %v59_v22  ;;  %77 = vst.msk [vmem:[#allocation5 + $0x28] sm:$0xff] %vm71_vm0, %v60_v23  ;;  %v62_v33 = vmin.f32 %v46_v24, 255.0  ;;  %v50_v34 = vmax.f32 %v34_v25, 0.0  ;;  %v51_v35 = vmax.f32 %v35_v26, 0.0  ;;  %v52_v36 = vmax.f32 %v36_v31, 0.0 }
  0x1b   :  { %v38_v37 = vld [vmem:[#allocation2 + $0x78] sm:$0xff]  ;;  %78 = vst.msk [vmem:[#allocation5 + $0x30] sm:$0xff] %vm71_vm0, %v61_v27  ;;  %v63_v38 = vmin.f32 %v47_v28, 255.0  ;;  %v64_v39 = vmin.f32 %v48_v29, 255.0  ;;  %v65_v40 = vmin.f32 %v49_v30, 255.0  ;;  %v53_v41 = vmax.f32 %v37_v32, 0.0 }
  0x1c   :  { %79 = vst.msk [vmem:[#allocation5 + $0x38] sm:$0xff] %vm71_vm0, %v62_v33  ;;  %v66_v42 = vmin.f32 %v50_v34, 255.0  ;;  %v67_v43 = vmin.f32 %v51_v35, 255.0  ;;  %v68_v44 = vmin.f32 %v52_v36, 255.0  ;;  %v54_v45 = vmax.f32 %v38_v37, 0.0  ;;  %s131_s21 = scalar_lea.vmem %s94_s20, 2048 }
  0x1d   :  { %80 = vst.msk [vmem:[#allocation5 + $0x40] sm:$0xff] %vm71_vm0, %v63_v38  ;;  %81 = vst.msk [vmem:[#allocation5 + $0x48] sm:$0xff] %vm71_vm0, %v64_v39  ;;  %v69_v46 = vmin.f32 %v53_v41, 255.0  ;;  %p132_p8 = scmp.ne.s32.totalorder %s94_s20, %s131_s21  ;;  %p137_p10 = scmp.lt.s32.totalorder %s131_s21, %s131_s21 }
  0x1e   :  { %82 = vst.msk [vmem:[#allocation5 + $0x50] sm:$0xff] %vm71_vm0, %v65_v40  ;;  %83 = vst.msk [vmem:[#allocation5 + $0x58] sm:$0xff] %vm71_vm0, %v66_v42  ;;  %v70_v47 = vmin.f32 %v54_v45, 255.0 }
  0x1f   :  { %84 = vst.msk [vmem:[#allocation5 + $0x60] sm:$0xff] %vm71_vm0, %v67_v43  ;;  %85 = vst.msk [vmem:[#allocation5 + $0x68] sm:$0xff] %vm71_vm0, %v68_v44  ;;  %p138_p11 = por %p137_p10, %p136_p9 }
  0x20   :  { %86 = vst.msk [vmem:[#allocation5 + $0x70] sm:$0xff] %vm71_vm0, %v69_v46  ;;  %87 = vst.msk [vmem:[#allocation5 + $0x78] sm:$0xff] %vm71_vm0, %v70_v47 }
  0x21   :  { %p139_p12 = pnand %p138_p11, %p132_p8 }
  0x23   :  { %142 = shalt.err (!%p139_p12)
}
  0x24   :  { %s143_s24 = scalar_lea.hbm %s218_s1, 2048 }
  0x25   :  { %p144_p13 = scmp.ne.s32.totalorder %s218_s1, %s143_s24  ;;  %p147_p0 = scmp.lt.u32.totalorder %s143_s24, %s218_s1 }
  0x27   :  { %p149_p1 = pnand %p147_p0, %p144_p13 }
  0x29   :  { %152 = shalt.err (!%p149_p1)
}
  0x2a   :  { %99 = dma.vmem_to_hbm [thread:$0]  %s94_s20, 2048, %s218_s1, [#allocation4], %s158_s16, %s158_s16, %s159_s17  }
  0x2b   :  { %155 = dma.done.wait [#allocation4], 2048  }
  0x2c   :  { %156 = vsyncadd [#allocation4], 4294965248 }
  0x2d   :  { %103 = vsyncpa [#allocation3], 1 }
  0x2e   :  { %104 = vsyncpa [#allocation4], 1 }

</bundles_post_ra>
